<compile_context>
chip_gen: v6e
topology: v6e:2x2x1
jax: 0.10.0
libtpu: 0.0.40
codegen_flags: <defaults>
</compile_context>

<pallas_src>
import functools

import jax
import jax.numpy as jnp
from jax.experimental import pallas as pl
from jax.experimental.pallas import tpu as pltpu


def _round_up(a, b):
    return ((a + b - 1) // b) * b


def _entropy_kernel(x_ref, o_ref, acc_ref, *, n_rows, tm, n_steps):
    p = pl.program_id(0)   # parallel shard (TensorCore) index
    j = pl.program_id(1)   # reduction step over row tiles

    @pl.when(j == 0)
    def _():
        acc_ref[...] = jnp.zeros_like(acc_ref)

    # Logical (un-clamped) block id -> global rows covered by this step.
    block_id = p * n_steps + j
    row_idx = block_id * tm + jax.lax.broadcasted_iota(jnp.int32, (tm, 1), 0)
    valid = row_idx < n_rows                              # masks partial tail + duplicated clamped blocks

    x = x_ref[...].astype(jnp.float32)                    # (tm, C)
    m = jnp.max(x, axis=1, keepdims=True)                 # numerically stable
    z = x - m
    e = jnp.exp(z)                                        # single EUP pass per element
    s = jnp.sum(e, axis=1, keepdims=True)                 # (tm, 1)
    t = jnp.sum(e * z, axis=1, keepdims=True)             # (tm, 1)
    # per-row entropy: -(sum_c p*logp) = log(S) - T/S   (exact divide to keep 1e-5 tolerance)
    contrib = jnp.log(s) - t / s
    contrib = jnp.where(valid, contrib, 0.0)

    acc_ref[...] = acc_ref[...] + contrib                 # cheap VPU add; no per-step scalar reduce

    @pl.when(j == pl.num_programs(1) - 1)
    def _():
        total = jnp.sum(acc_ref[...])                     # one-time cross-sublane reduce
        o_ref[...] = jnp.full(o_ref.shape, total, jnp.float32)   # lane-dense replicated partial


def entropy(x, *, tm=None, num_parallel=2, vmem_input_budget_bytes=24 * 1024 * 1024):
    """Pallas TPU entropy over logits. softmax/log_softmax along axis 1, summed over everything."""
    if x.ndim != 2:
        # PyTorch softmax(dim=1) on higher-rank input: move class axis last, flatten the rest.
        C = x.shape[1]
        x = jnp.moveaxis(x, 1, -1).reshape(-1, C)
    N, C = x.shape
    itemsize = jnp.dtype(x.dtype).itemsize

    # TODO(synk): for vocab-scale C that cannot fit a full (tm, C) row tile in VMEM, add an
    # online-softmax path with C as an inner "arbitrary" grid axis; and for C << 128 the lane
    # axis is under-utilized (a wrapper-side row-packing layout would recover VPU/EUP throughput).
    if tm is None:
        # Largest row tile whose double-buffered input stays inside the VMEM budget
        # (budget kept conservative so it also fits v7x's 64 MiB physical VMEM).
        tm = vmem_input_budget_bytes // (2 * C * itemsize)
        tm = min(tm, 8192)
    tm = min(tm, _round_up(N, 8))
    tm = max(8, (tm // 8) * 8)

    total_blocks = pl.cdiv(N, tm)
    P = num_parallel if total_blocks >= num_parallel else 1
    n_steps = pl.cdiv(total_blocks, P)
    last_block = total_blocks - 1

    def x_index_map(p, j):
        # Clamp so the DMA window always stays in-bounds; duplicated/tail blocks
        # are zero-masked inside the kernel via the global row index.
        return (jnp.minimum(p * n_steps + j, last_block), 0)

    kernel = functools.partial(_entropy_kernel, n_rows=N, tm=tm, n_steps=n_steps)

    tile_bytes = tm * C * itemsize
    vmem_limit = int(min(2 * tile_bytes + tm * 4 + (8 << 20), 56 * 1024 * 1024))

    out = pl.pallas_call(
        kernel,
        out_shape=jax.ShapeDtypeStruct((P * 8, 128), jnp.float32),
        grid_spec=pltpu.PrefetchScalarGridSpec(
            num_scalar_prefetch=0,
            grid=(P, n_steps),
            in_specs=[pl.BlockSpec((tm, C), x_index_map)],
            out_specs=pl.BlockSpec((8, 128), lambda p, j: (p, 0)),
            scratch_shapes=[pltpu.VMEM((tm, 1), jnp.float32)],
        ),
        compiler_params=pltpu.CompilerParams(
            dimension_semantics=("parallel", "arbitrary"),
            vmem_limit_bytes=vmem_limit,
        ),
    )(x)
    # One replicated (8,128) partial per parallel shard; pick one lane per shard and sum.
    return jnp.sum(out[0::8, 0])


if __name__ == "__main__":
    key = jax.random.PRNGKey(0)

    def _ref_entropy(x2d):
        return -jnp.sum(jax.nn.softmax(x2d, axis=1) * jax.nn.log_softmax(x2d, axis=1))

    # Case 1: small, evenly tiled.
    N, C = 16, 32
    x = jax.random.normal(key, (N, C), dtype=jnp.float32)
    y = jax.block_until_ready(entropy(x))
    y_ref = _ref_entropy(x)
    assert jnp.allclose(y, y_ref, rtol=1e-5, atol=1e-5), (y, y_ref)

    # Case 2: ragged N, multi-step grid with 2-way parallel split + tail masking.
    N2, C2 = 37, 32
    x2 = jax.random.normal(jax.random.PRNGKey(1), (N2, C2), dtype=jnp.float32)
    y2 = jax.block_until_ready(entropy(x2, tm=8, num_parallel=2))
    y2_ref = _ref_entropy(x2)
    assert jnp.allclose(y2, y2_ref, rtol=1e-5, atol=1e-5), (y2, y2_ref)

    print("KERNEL_OK")
</pallas_src>

<mosaic_0001>
module attributes {stable_mosaic.version = 11 : i64} {
  func.func @_entropy_kernel(%arg0: i32, %arg1: i32, %arg2: memref<16x32xf32, #tpu.memory_space<vmem>>, %arg3: memref<8x128xf32, #tpu.memory_space<vmem>>, %arg4: memref<16x1xf32, #tpu.memory_space<vmem>>) attributes {dimension_semantics = [#tpu.dimension_semantics<parallel>, #tpu.dimension_semantics<arbitrary>], iteration_bounds = array<i64: 1, 1>, scalar_prefetch = 0 : i64, scratch_operands = 1 : i64, tpu.core_type = #tpu.core_type<tc>, window_params = [{transform_indices = @transform_0, window_bounds = array<i64: 16, 32>}, {transform_indices = @transform_1, window_bounds = array<i64: 8, 128>}]} {
    %c0_i32 = arith.constant 0 : i32
    %0 = arith.cmpi eq, %arg1, %c0_i32 : i32
    %1 = arith.extui %0 : i1 to i32
    %c0_i32_0 = arith.constant 0 : i32
    %2 = arith.cmpi ne, %1, %c0_i32_0 : i32
    scf.if %2 {
      %cst_12 = arith.constant 0.000000e+00 : f32
      %33 = vector.broadcast %cst_12 : f32 to vector<16x1xf32>
      %c0_13 = arith.constant 0 : index
      %c0_14 = arith.constant 0 : index
      %34 = vector.load %arg4[%c0_13, %c0_14] : memref<16x1xf32, #tpu.memory_space<vmem>>, vector<16x1xf32>
      tpu.vector_store %arg4[%c0_13, %c0_14], %33 {strides = array<i32>} : memref<16x1xf32, #tpu.memory_space<vmem>>, vector<16x1xf32>,
    } else {
    }
    %c1_i32 = arith.constant 1 : i32
    %3 = arith.muli %arg0, %c1_i32 : i32
    %4 = arith.addi %3, %arg1 : i32
    %c16_i32 = arith.constant 16 : i32
    %5 = arith.muli %4, %c16_i32 : i32
    %6 = tpu.iota {dimensions = array<i32: 0>} : vector<16x1xi32>
    %7 = vector.broadcast %5 : i32 to vector<16x1xi32>
    %8 = arith.addi %7, %6 : vector<16x1xi32>
    %c16_i32_1 = arith.constant 16 : i32
    %9 = vector.broadcast %c16_i32_1 : i32 to vector<16x1xi32>
    %10 = arith.cmpi slt, %8, %9 : vector<16x1xi32>
    %c0 = arith.constant 0 : index
    %c0_2 = arith.constant 0 : index
    %11 = vector.load %arg2[%c0, %c0_2] : memref<16x32xf32, #tpu.memory_space<vmem>>, vector<16x32xf32>
    %cst = arith.constant dense<0xFF800000> : vector<16xf32>
    %12 = vector.multi_reduction <maximumf>, %11, %cst [1] : vector<16x32xf32> to vector<16xf32>
    %13 = vector.shape_cast %12 : vector<16xf32> to vector<16x1xf32>
    %14 = vector.broadcast %13 : vector<16x1xf32> to vector<16x32xf32>
    %15 = arith.subf %11, %14 : vector<16x32xf32>
    %16 = math.exp %15 : vector<16x32xf32>
    %cst_3 = arith.constant dense<0.000000e+00> : vector<16xf32>
    %17 = vector.multi_reduction <add>, %16, %cst_3 [1] : vector<16x32xf32> to vector<16xf32>
    %18 = vector.shape_cast %17 : vector<16xf32> to vector<16x1xf32>
    %19 = arith.mulf %16, %15 : vector<16x32xf32>
    %cst_4 = arith.constant dense<0.000000e+00> : vector<16xf32>
    %20 = vector.multi_reduction <add>, %19, %cst_4 [1] : vector<16x32xf32> to vector<16xf32>
    %21 = vector.shape_cast %20 : vector<16xf32> to vector<16x1xf32>
    %22 = math.log %18 : vector<16x1xf32>
    %23 = arith.divf %21, %18 : vector<16x1xf32>
    %24 = arith.subf %22, %23 : vector<16x1xf32>
    %cst_5 = arith.constant 0.000000e+00 : f32
    %25 = vector.broadcast %cst_5 : f32 to vector<16x1xf32>
    %26 = arith.select %10, %24, %25 : vector<16x1xi1>, vector<16x1xf32>
    %c0_6 = arith.constant 0 : index
    %c0_7 = arith.constant 0 : index
    %27 = vector.load %arg4[%c0_6, %c0_7] : memref<16x1xf32, #tpu.memory_space<vmem>>, vector<16x1xf32>
    %28 = arith.addf %27, %26 : vector<16x1xf32>
    %c0_8 = arith.constant 0 : index
    %c0_9 = arith.constant 0 : index
    %29 = vector.load %arg4[%c0_8, %c0_9] : memref<16x1xf32, #tpu.memory_space<vmem>>, vector<16x1xf32>
    tpu.vector_store %arg4[%c0_8, %c0_9], %28 {strides = array<i32>} : memref<16x1xf32, #tpu.memory_space<vmem>>, vector<16x1xf32>,
    %c0_i32_10 = arith.constant 0 : i32
    %30 = arith.cmpi eq, %arg1, %c0_i32_10 : i32
    %31 = arith.extui %30 : i1 to i32
    %c0_i32_11 = arith.constant 0 : i32
    %32 = arith.cmpi ne, %31, %c0_i32_11 : i32
    scf.if %32 {
      %c0_12 = arith.constant 0 : index
      %c0_13 = arith.constant 0 : index
      %33 = vector.load %arg4[%c0_12, %c0_13] : memref<16x1xf32, #tpu.memory_space<vmem>>, vector<16x1xf32>
      %34 = vector.shape_cast %33 : vector<16x1xf32> to vector<1x16x1xf32>
      %cst_14 = arith.constant dense<0.000000e+00> : vector<1xf32>
      %35 = vector.multi_reduction <add>, %34, %cst_14 [1, 2] : vector<1x16x1xf32> to vector<1xf32>
      %36 = vector.shape_cast %35 : vector<1xf32> to vector<1x1x1xf32>
      %37 = vector.extract %36[0, 0, 0] : f32 from vector<1x1x1xf32>
      %38 = vector.broadcast %37 : f32 to vector<8x128xf32>
      %c0_15 = arith.constant 0 : index
      %c0_16 = arith.constant 0 : index
      %39 = vector.load %arg3[%c0_15, %c0_16] : memref<8x128xf32, #tpu.memory_space<vmem>>, vector<8x128xf32>
      tpu.vector_store %arg3[%c0_15, %c0_16], %38 {strides = array<i32>} : memref<8x128xf32, #tpu.memory_space<vmem>>, vector<8x128xf32>,
    } else {
    }
    return
  }
  func.func @transform_0(%arg0: i32, %arg1: i32) -> (i32, i32) {
    %c1_i32 = arith.constant 1 : i32
    %0 = arith.muli %arg0, %c1_i32 : i32
    %1 = arith.addi %0, %arg1 : i32
    %c0_i32 = arith.constant 0 : i32
    %2 = arith.minsi %1, %c0_i32 : i32
    %c0_i32_0 = arith.constant 0 : i32
    %c0_i32_1 = arith.constant 0 : i32
    return %2, %c0_i32_0 : i32, i32
  }
  func.func @transform_1(%arg0: i32, %arg1: i32) -> (i32, i32) {
    %c0_i32 = arith.constant 0 : i32
    %c0_i32_0 = arith.constant 0 : i32
    return %arg0, %c0_i32 : i32, i32
  }
}

</mosaic_0001>

<bundles_post_ra>
// kernel: tpu_custom_call.1
= control target key start
LH: loop header
LB: loop body
LE: loop exit
PB: predicated region body
PF: predicated region fallthrough
CT: control target
= control target key end

     0   :  { %6 = vsyncpa [#allocation4], 0  ;;  %s230_s0 = inlined_call_operand.hbm [shape: f32[16,32], index: 0, kind: input, shape index: {}]   ;;  %s231_s1 = inlined_call_operand.hbm [shape: f32[8,128], index: 1, kind: output, shape index: {}]  }
   0x1   :  { %7 = vsyncpa [#allocation5], 0  ;;  %s197_s6 = smov [#allocation3]  }
   0x2   :  { %s19_s7 = sshll.u32 %s197_s6, 4  ;;  %s20_s7 = int_to_ptr.vmem [resolvable:$true] %s19_s7 }
   0x3   :  { %s161_s8 = scalar_lea.vmem %s20_s7, 256  ;;  %p166_p1 = scmp.lt.s32.totalorder %s20_s7, %s20_s7 }
   0x4   :  { %p162_p0 = scmp.ne.s32.totalorder %s20_s7, %s161_s8  ;;  %p167_p2 = scmp.lt.s32.totalorder %s161_s8, %s161_s8 }
   0x6   :  { %p168_p3 = por %p167_p2, %p166_p1 }
   0x8   :  { %p169_p4 = pnand %p168_p3, %p162_p0 }
   0xa   :  { %172 = shalt.err (!%p169_p4)
}
   0xb   :  { %s198_s9 = smov 128   ;;  %s199_s10 = smov 8  }
   0xc   :  { %25 = dma.hbm_to_vmem [thread:$0]  %s230_s0, 256, %s20_s7, [#allocation4], %s198_s9, %s198_s9, %s199_s10  }
   0xd   :  { %193 = dma.done.wait [#allocation4], 256  }
   0xe   :  { %194 = vsyncadd [#allocation4], 4294967040  ;;  %vm52_vm0 = vcmask 261120   ;;  %v50_v0 = vld [vmem:[#allocation3] sm:$0xff]  ;;  %v51_v1 = vld [vmem:[#allocation3 + $0x8] sm:$0xff]  ;;  %vm37_vm1 = vcmask 7168  }
   0xf   :  { %v53_v2 = vsel %vm52_vm0, %v50_v0, -inf  ;;  %v56_v3 = vsel %vm52_vm0, %v51_v1, -inf  ;;  %v200_v18 = vmov 0.0   ;;  %s201_s0 = smov [#allocation6]  }
  0x10   :  { %54 = vmax.xlane.f32.xlu0 %v53_v2  ;;  %38 = vst.msk [vmem:[#allocation2] sm:$0xff] %vm37_vm1, %v200_v18  ;;  %39 = vst.msk [vmem:[#allocation2 + $0x8] sm:$0xff] %vm37_vm1, %v200_v18  ;;  %s123_s13 = sshll.u32 %s201_s0, 4  ;;  %s124_s13 = int_to_ptr.vmem [resolvable:$true] %s123_s13 }
  0x11   :  { %s173_s15 = scalar_lea.vmem %s124_s13, 128  ;;  %p178_p6 = scmp.lt.s32.totalorder %s124_s13, %s124_s13 }
  0x12   :  { %p174_p5 = scmp.ne.s32.totalorder %s124_s13, %s173_s15  ;;  %p179_p7 = scmp.lt.s32.totalorder %s173_s15, %s173_s15 }
  0x14   :  { %57 = vmax.xlane.f32.xlu0 %v56_v3  ;;  %p180_p8 = por %p179_p7, %p178_p6 }
  0x16   :  { %p181_p9 = pnand %p180_p8, %p174_p5 }
  0x17   :  { %v91_v26 = vld [vmem:[#allocation2] sm:$0xff]  ;;  %v92_v34 = vld [vmem:[#allocation2 + $0x8] sm:$0xff] }
  0x99   :  { %v55_v4 = vpop.xlane.xlu0 %54 }
  0x9a   :  { %v59_v5 = vsub.f32 %v50_v0, %v55_v4 }
  0x9c   :  { %v61_v6 = vmul.f32 1.442695, %v59_v5 }
  0x9d   :  { %v58_v7 = vpop.xlane.xlu0 %57 }
  0x9e   :  { %141 = vpow2.f32 %v61_v6  ;;  %v60_v8 = vsub.f32 %v51_v1, %v58_v7 }
  0xa0   :  { %v63_v9 = vmul.f32 1.442695, %v60_v8 }
  0xa2   :  { %143 = vpow2.f32 %v63_v9 }
  0xab   :  { %v142_v10 = vpop.eup %141 }
  0xac   :  { %v65_v11 = vsel %vm52_vm0, %v142_v10, 0.0  ;;  %v71_v12 = vmul.f32 %v142_v10, %v59_v5 }
  0xad   :  { %66 = vadd.xlane.f32.xlu1 %v65_v11 }
  0xae   :  { %v73_v13 = vsel %vm52_vm0, %v71_v12, 0.0 }
  0xaf   :  { %v144_v14 = vpop.eup %143  ;;  %74 = vadd.xlane.f32.xlu0 %v73_v13 }
  0xb0   :  { %v68_v15 = vsel %vm52_vm0, %v144_v14, 0.0  ;;  %v72_v16 = vmul.f32 %v144_v14, %v60_v8 }
  0xb1   :  { %69 = vadd.xlane.f32.xlu1 %v68_v15 }
  0xb2   :  { %v76_v17 = vsel %vm52_vm0, %v72_v16, 0.0 }
  0xb5   :  { %77 = vadd.xlane.f32.xlu1 %v76_v17 }
 0x136   :  { %v67_v19 = vpop.xlane.xlu1 %66 }
 0x137   :  { %145 = vlog2.f32 %v67_v19 }
 0x138   :  { %147 = vrcp.f32 %v67_v19  ;;  %v75_v24 = vpop.xlane.xlu0 %74 }
 0x13a   :  { %v70_v20 = vpop.xlane.xlu1 %69 }
 0x13b   :  { %149 = vlog2.f32 %v70_v20 }
 0x13c   :  { %151 = vrcp.f32 %v70_v20 }
 0x13e   :  { %v78_v31 = vpop.xlane.xlu1 %77 }
 0x144   :  { %v146_v21 = vpop.eup %145 }
 0x145   :  { %v148_v22 = vpop.eup %147  ;;  %v80_v23 = vmul.f32 0.6931472, %v146_v21 }
 0x146   :  { %v84_v25 = vmul.f32 %v148_v22, %v75_v24 }
 0x148   :  { %v150_v27 = vpop.eup %149  ;;  %v87_v28 = vsub.f32 %v80_v23, %v84_v25 }
 0x149   :  { %v152_v29 = vpop.eup %151  ;;  %v82_v30 = vmul.f32 0.6931472, %v150_v27 }
 0x14a   :  { %v93_v32 = vadd.f32 %v91_v26, %v87_v28  ;;  %v86_v33 = vmul.f32 %v152_v29, %v78_v31 }
 0x14c   :  { %96 = vst.msk [vmem:[#allocation2] sm:$0xff] %vm37_vm1, %v93_v32  ;;  %v88_v35 = vsub.f32 %v82_v30, %v86_v33 }
 0x14e   :  { %v94_v36 = vadd.f32 %v92_v34, %v88_v35 }
 0x150   :  { %97 = vst.msk [vmem:[#allocation2 + $0x8] sm:$0xff] %vm37_vm1, %v94_v36 }
 0x153   :  { %v101_v37 = vld [vmem:[#allocation2] sm:$0xff] }
 0x154   :  { %v103_v39 = vsel %vm37_vm1, %v101_v37, 0.0 }
 0x157   :  { %v102_v38 = vld [vmem:[#allocation2 + $0x8] sm:$0xff] }
 0x158   :  { %v104_v40 = vsel %vm37_vm1, %v102_v38, 0.0 }
 0x159   :  { %v105_v41 = vadd.f32 %v104_v40, %v103_v39 }
 0x15b   :  { %106 = vadd.xlane.f32.xlu0 %v105_v41 }
 0x1e4   :  { %v107_v42 = vpop.xlane.xlu0 %106 }
 0x1e5   :  { %v108_v43 = vrot.slane %v107_v42, 4 }
 0x1e7   :  { %v109_v44 = vadd.f32 %v108_v43, %v107_v42 }
 0x1e9   :  { %v110_v45 = vrot.slane %v109_v44, 2 }
 0x1eb   :  { %v111_v46 = vadd.f32 %v110_v45, %v109_v44 }
 0x1ed   :  { %v112_v47 = vrot.slane %v111_v46, 1 }
 0x1ef   :  { %v113_v48 = vadd.f32 %v112_v47, %v111_v46 }
 0x1f1   :  { %134 = vpush %v113_v48 }
 0x222   :  { %s135_s14 = spop %134 }
 0x223   :  { %v115_v49 = vstv %s135_s14 }
 0x224   :  { %116 = vst [vmem:[#allocation6] sm:$0xff] %v115_v49 }
 0x225   :  { %184 = shalt.err (!%p181_p9)
}
 0x226   :  { %126 = dma.vmem_to_hbm [thread:$0]  %s124_s13, 128, %s231_s1, [#allocation5]  }
 0x227   :  { %195 = dma.done.wait [#allocation5], 128  }
 0x228   :  { %196 = vsyncadd [#allocation5], 4294967168 }
 0x229   :  { %130 = vsyncpa [#allocation4], 1 }
 0x22a   :  { %131 = vsyncpa [#allocation5], 1 }

</bundles_post_ra>
